<compile_context>
chip_gen: v5e
topology: v5e:2x2
jax: 0.10.0
libtpu: 0.0.40
codegen_flags: <defaults>
</compile_context>

<pallas_src>
import jax
import jax.numpy as jnp
from jax.experimental import pallas as pl
from jax.experimental.pallas import tpu as pltpu


def _swish_kernel(sp_ref, x_ref, o_ref):
    # sp = softplus(beta), precomputed once in the wrapper (SMEM scalar).
    sp = sp_ref[0]
    x = x_ref[...].astype(jnp.float32)
    # Single logistic per element (one EUP pass) stays hidden under DMA even
    # on v7x's per-TC HBM bandwidth.
    y = x * jax.nn.sigmoid(x * sp) * jnp.float32(1.0 / 1.1)
    o_ref[...] = y.astype(o_ref.dtype)


def _target_block_bytes():
    """Per-buffer block-size target derived from the TPU generation."""
    try:
        kind = jax.devices()[0].device_kind.lower()
    except Exception:  # pragma: no cover - be conservative if query fails
        kind = ""
    # v5e: 16 MiB default scoped VMEM -> 2 MiB blocks (in+out double-buffered = 8 MiB).
    if "v5" in kind:
        return 2 * 1024 * 1024
    # v6e / v7x: 32 MiB default scoped VMEM -> 4 MiB blocks (16 MiB resident).
    return 4 * 1024 * 1024


def _pick_width(n):
    """Widest lane-dense slab width that divides n exactly (0 => ragged)."""
    for w in (1024, 512, 256, 128):
        if n % w == 0:
            return w
    return 0


def swish(x, beta, *, donate_x=False):
    """Swish(x) = x * sigmoid(x * softplus(beta)) / 1.1, elementwise.

    donate_x=True only lets XLA reuse x's HBM buffer for the output (memory
    footprint, NOT bandwidth -- the output write still happens), and it is
    only effective when the caller genuinely donates x under jit; otherwise
    XLA inserts a defensive copy.
    """
    orig_shape = x.shape
    n = x.size
    itemsize = jnp.dtype(x.dtype).itemsize
    target_bytes = _target_block_bytes()

    width = _pick_width(n)
    if width:
        # Fast path: collapse to a lane-dense (rows, width) slab.  For the
        # default row-major layout this reshape is a bitcast (no relayout copy).
        mat = x.reshape(-1, width)
        rows = mat.shape[0]
        n_bytes = n * itemsize

        if n_bytes <= (1 << 20):
            # Small tensor: a single block (full dims are always a legal block).
            block_rows = rows
        else:
            # Guarantee >= 2 (prefer even) grid steps so ("parallel",) can
            # shard across both v7x TensorCores; round block_rows to a
            # sublane-friendly multiple of 32 (covers f32/bf16/int8 packing).
            target_rows = max(32, target_bytes // (width * itemsize))
            num_blocks = max(2, pl.cdiv(rows, target_rows))
            if num_blocks % 2:
                num_blocks += 1
            block_rows = max(32, ((pl.cdiv(rows, num_blocks) + 31) // 32) * 32)
        grid = (pl.cdiv(rows, block_rows),)
        block_shape = (block_rows, width)
        index_map = lambda i: (i, 0)
        arg = mat
        out_shape = jax.ShapeDtypeStruct(mat.shape, mat.dtype)
    else:
        # Ragged path (numel not a multiple of 128): run directly over the
        # flat 1-D view.  The cdiv grid clips the partial tail block inside
        # the pipeline, so we never jnp.pad the input or slice the output
        # (each of which would be a full extra HBM round trip).
        flat = x.reshape(-1)
        max_block = 64 * 1024  # elements; keeps the 1-D layout well inside VMEM
        block_n = n if n <= max_block else max_block
        grid = (pl.cdiv(n, block_n),)
        block_shape = (block_n,)
        index_map = lambda i: (i,)
        arg = flat
        out_shape = jax.ShapeDtypeStruct(flat.shape, flat.dtype)

    # Numerically stable softplus(beta), hoisted out of the kernel.
    sp = jax.nn.softplus(beta.astype(jnp.float32)).reshape((1,))

    out = pl.pallas_call(
        _swish_kernel,
        out_shape=out_shape,
        grid=grid,
        in_specs=[
            pl.BlockSpec(memory_space=pltpu.MemorySpace.SMEM),  # softplus(beta) scalar
            pl.BlockSpec(block_shape, index_map),               # x slab tile
        ],
        out_specs=pl.BlockSpec(block_shape, index_map),
        compiler_params=pltpu.CompilerParams(
            dimension_semantics=("parallel",)),
        cost_estimate=pl.CostEstimate(
            flops=5 * n,
            transcendentals=n,
            bytes_accessed=2 * n * itemsize),
        input_output_aliases=({1: 0} if donate_x else {}),
    )(sp, arg)

    return out.reshape(orig_shape)


if __name__ == "__main__":
    key = jax.random.PRNGKey(0)
    # NCHW input, matching typical conv-net usage of this activation.
    x = jax.random.normal(key, (2, 4, 16, 16), dtype=jnp.float32)
    # Deterministic parameter init (matches nn.Parameter(torch.tensor([0.5]))).
    beta = jnp.array([0.5], dtype=jnp.float32)

    y = jax.block_until_ready(swish(x, beta))

    # Pure-JAX reference for correctness.
    sp = jax.nn.softplus(beta)[0]
    y_ref = (x * jax.nn.sigmoid(x * sp)) / 1.1
    assert y.shape == x.shape and y.dtype == x.dtype
    assert jnp.allclose(y, y_ref, rtol=1e-5, atol=1e-6)

    print("KERNEL_OK")
</pallas_src>

<mosaic_0001>
module attributes {stable_mosaic.version = 11 : i64} {
  func.func @_swish_kernel(%arg0: i32, %arg1: memref<1xf32, #tpu.memory_space<smem>>, %arg2: memref<2x1024xf32, #tpu.memory_space<vmem>>, %arg3: memref<2x1024xf32, #tpu.memory_space<vmem>>) attributes {dimension_semantics = [#tpu.dimension_semantics<parallel>], iteration_bounds = array<i64: 1>, scalar_prefetch = 0 : i64, scratch_operands = 0 : i64, tpu.core_type = #tpu.core_type<tc>, window_params = [{transform_indices = @transform_0, window_bounds = array<i64: 1>}, {transform_indices = @transform_1, window_bounds = array<i64: 2, 1024>}, {transform_indices = @transform_2, window_bounds = array<i64: 2, 1024>}]} {
    %c0 = arith.constant 0 : index
    %0 = memref.load %arg1[%c0] : memref<1xf32, #tpu.memory_space<smem>>
    %c0_0 = arith.constant 0 : index
    %c0_1 = arith.constant 0 : index
    %1 = vector.load %arg2[%c0_0, %c0_1] : memref<2x1024xf32, #tpu.memory_space<vmem>>, vector<2x1024xf32>
    %2 = vector.broadcast %0 : f32 to vector<2x1024xf32>
    %3 = arith.mulf %1, %2 : vector<2x1024xf32>
    %4 = arith.negf %3 : vector<2x1024xf32>
    %5 = math.exp %4 : vector<2x1024xf32>
    %cst = arith.constant 1.000000e+00 : f32
    %6 = vector.broadcast %cst : f32 to vector<2x1024xf32>
    %7 = arith.addf %6, %5 : vector<2x1024xf32>
    %8 = arith.divf %6, %7 : vector<2x1024xf32>
    %9 = arith.mulf %1, %8 : vector<2x1024xf32>
    %cst_2 = arith.constant 0.909090936 : f32
    %10 = vector.broadcast %cst_2 : f32 to vector<2x1024xf32>
    %11 = arith.mulf %9, %10 : vector<2x1024xf32>
    %c0_3 = arith.constant 0 : index
    %c0_4 = arith.constant 0 : index
    %12 = vector.load %arg3[%c0_3, %c0_4] : memref<2x1024xf32, #tpu.memory_space<vmem>>, vector<2x1024xf32>
    tpu.vector_store %arg3[%c0_3, %c0_4], %11 {strides = array<i32>} : memref<2x1024xf32, #tpu.memory_space<vmem>>, vector<2x1024xf32>,
    return
  }
  func.func @transform_0(%arg0: i32) -> i32 {
    %c0_i32 = arith.constant 0 : i32
    %c0_i32_0 = arith.constant 0 : i32
    return %c0_i32 : i32
  }
  func.func @transform_1(%arg0: i32) -> (i32, i32) {
    %c0_i32 = arith.constant 0 : i32
    %c0_i32_0 = arith.constant 0 : i32
    return %arg0, %c0_i32 : i32, i32
  }
  func.func @transform_2(%arg0: i32) -> (i32, i32) {
    %c0_i32 = arith.constant 0 : i32
    %c0_i32_0 = arith.constant 0 : i32
    return %arg0, %c0_i32 : i32, i32
  }
}

</mosaic_0001>

<bundles_post_ra>
// kernel: tpu_custom_call.1
= control target key start
LH: loop header
LB: loop body
LE: loop exit
PB: predicated region body
PF: predicated region fallthrough
CT: control target
= control target key end

     0   :  { %8 = vsyncpa [#allocation4], 0  ;;  %s184_s0 = inlined_call_operand.<no memory space> [shape: f32[1], index: 0, kind: input, shape index: {}]   ;;  %s185_s1 = inlined_call_operand.hbm [shape: f32[2,1024], index: 1, kind: input, shape index: {}]   ;;  %s186_s2 = inlined_call_operand.hbm [shape: f32[2,1024], index: 2, kind: output, shape index: {}]  }
   0x1   :  { %9 = vsyncpa [#allocation5], 0  ;;  %s17_s11 = sshll.u32 %s185_s1, 4  ;;  %s158_s12 = smov [#allocation3]   ;;  %s18_s11 = int_to_ptr.hbm [resolvable:$true] %s17_s11 }
   0x2   :  { %s19_s13 = sshll.u32 %s158_s12, 4  ;;  %s20_s13 = int_to_ptr.vmem [resolvable:$true] %s19_s13 }
   0x3   :  { %22 = dma.hbm_to_vmem [thread:$0]  %s18_s11, 256, %s20_s13, [#allocation4]  }
   0x4   :  { %154 = dma.done.wait [#allocation4], 256  }
   0x5   :  { %155 = vsyncadd [#allocation4], 4294967040  ;;  %v30_v0 = vstv %s184_s0  ;;  %v28_v1 = vld [vmem:[#allocation3] sm:$0xff]  ;;  %v29_v2 = vld [vmem:[#allocation3 + $0x8] sm:$0xff]  ;;  %s159_s0 = smov [#allocation6]   ;;  %s84_s18 = sshll.u32 %s186_s2, 4  ;;  %s85_s18 = int_to_ptr.hbm [resolvable:$true] %s84_s18 }
   0x6   :  { %v31_v3 = vmul.f32 %v30_v0, %v28_v1  ;;  %v32_v4 = vmul.f32 %v30_v0, %v29_v2  ;;  %s82_s1 = sshll.u32 %s159_s0, 4  ;;  %s83_s1 = int_to_ptr.vmem [resolvable:$true] %s82_s1 }
   0x8   :  { %v94_v5 = vmul.f32 -1.442695, %v31_v3  ;;  %v95_v6 = vmul.f32 -1.442695, %v32_v4 }
   0xa   :  { %98 = vpow2.f32 %v94_v5 }
   0xb   :  { %100 = vpow2.f32 %v95_v6 }
  0x10   :  { %v99_v7 = vpop.eup %98 }
  0x11   :  { %v101_v8 = vpop.eup %100  ;;  %v39_v9 = vadd.f32 1.0, %v99_v7 }
  0x12   :  { %v40_v10 = vadd.f32 1.0, %v101_v8 }
  0x13   :  { %102 = vrcp.f32 %v39_v9  ;;  %vm46_vm0 = vweird.f32 %v39_v9  ;;  %v52_v14 = vand.u32 2147483648, %v39_v9  ;;  %v50_v17 = vand.u32 2147483647, %v39_v9 }
  0x14   :  { %104 = vrcp.f32 %v40_v10  ;;  %v67_v18 = vand.u32 2147483648, %v40_v10  ;;  %vm61_vm2 = vweird.f32 %v40_v10  ;;  %v65_v20 = vand.u32 2147483647, %v40_v10 }
  0x15   :  { %v53_v22 = vor.u32 1.1754944e-38, %v52_v14  ;;  %vm51_vm5 = vcmp.eq.f32.partialorder %v50_v17, 8.507059e+37 }
  0x16   :  { %v68_v25 = vor.u32 1.1754944e-38, %v67_v18  ;;  %vm66_vm7 = vcmp.eq.f32.partialorder %v65_v20, 8.507059e+37 }
  0x19   :  { %v103_v11 = vpop.eup %102 }
  0x1a   :  { %v105_v12 = vpop.eup %104  ;;  %v42_v13 = vmul.f32 %v103_v11, %v39_v9  ;;  %vm47_vm1 = vweird.f32 %v103_v11 }
  0x1b   :  { %v57_v15 = vmul.f32 %v105_v12, %v40_v10  ;;  %vm62_vm3 = vweird.f32 %v105_v12  ;;  %vm48_vm4 = vmor %vm46_vm0, %vm47_vm1 }
  0x1c   :  { %v43_v16 = vsub.f32 1.0, %v42_v13  ;;  %vm63_vm6 = vmor %vm61_vm2, %vm62_vm3 }
  0x1d   :  { %v58_v19 = vsub.f32 1.0, %v57_v15 }
  0x1e   :  { %v44_v21 = vmul.f32 %v103_v11, %v43_v16 }
  0x1f   :  { %v59_v23 = vmul.f32 %v105_v12, %v58_v19 }
  0x20   :  { %v45_v24 = vadd.f32 %v103_v11, %v44_v21 }
  0x21   :  { %v60_v26 = vadd.f32 %v105_v12, %v59_v23 }
  0x22   :  { %v49_v27 = vsel %vm48_vm4, %v103_v11, %v45_v24 }
  0x23   :  { %v54_v28 = vsel %vm51_vm5, %v53_v22, %v49_v27  ;;  %v64_v29 = vsel %vm63_vm6, %v105_v12, %v60_v26 }
  0x24   :  { %v71_v30 = vmul.f32 %v54_v28, %v28_v1  ;;  %v69_v31 = vsel %vm66_vm7, %v68_v25, %v64_v29 }
  0x25   :  { %v72_v32 = vmul.f32 %v69_v31, %v29_v2 }
  0x26   :  { %v73_v33 = vmul.f32 0.90909094, %v71_v30 }
  0x27   :  { %v74_v34 = vmul.f32 0.90909094, %v72_v32 }
  0x28   :  { %75 = vst [vmem:[#allocation6] sm:$0xff] %v73_v33 }
  0x29   :  { %76 = vst [vmem:[#allocation6 + $0x8] sm:$0xff] %v74_v34 }
  0x2a   :  { %87 = dma.vmem_to_hbm [thread:$0]  %s83_s1, 256, %s85_s18, [#allocation5]  }
  0x2b   :  { %156 = dma.done.wait [#allocation5], 256  }
  0x2c   :  { %157 = vsyncadd [#allocation5], 4294967040 }
  0x2d   :  { %92 = vsyncpa [#allocation4], 1 }
  0x2e   :  { %93 = vsyncpa [#allocation5], 1 }

</bundles_post_ra>
